<compile_context>
chip_gen: v7x
topology: tpu7x:2x2x1
jax: 0.10.0
libtpu: 0.0.40
codegen_flags: <defaults>
</compile_context>

<pallas_src>
import functools

import jax
import jax.numpy as jnp
import numpy as np
from jax.experimental import pallas as pl
from jax.experimental.pallas import tpu as pltpu


# ----------------------------------------------------------------------------
# Parameter packing: fold a bank of Conv1d filters into per-shift combined
# weights.  For shift s, filter j (kernel size K_j) contributes its tap
# W_j[:, :, K_j - 1 - s] (transposed to (Cin, Cout)); zero columns if s >= K_j.
# Weights are stored in bf16 (MXU operands); bias stays f32.
# ----------------------------------------------------------------------------
def pack_layer(layer_params, filters, filter_num):
    """layer_params: [(w (Cout, Cin, K), b (Cout,)), ...] in filter order.
    Returns W (maxK, Cin, nf*filter_num) bf16, b (1, nf*filter_num) f32."""
    max_k = max(filters)
    slices = []
    for s in range(max_k):
        parts = []
        for (w, _), K in zip(layer_params, filters):
            cin = w.shape[1]
            if s < K:
                parts.append(jnp.transpose(w[:, :, K - 1 - s]))      # (Cin, Cout)
            else:
                parts.append(jnp.zeros((cin, filter_num), w.dtype))  # no tap
        slices.append(jnp.concatenate(parts, axis=-1))               # (Cin, Ctot)
    W = jnp.stack(slices, axis=0).astype(jnp.bfloat16)               # (maxK,Cin,Ctot)
    b = jnp.concatenate([b for (_, b) in layer_params])[None, :].astype(jnp.float32)
    return W, b


# ----------------------------------------------------------------------------
# Fused Pallas kernel: all layers + ReLU (+ optional max-pool) per batch block
# ----------------------------------------------------------------------------
def make_fused_kernel(num_layers, max_pool):
    def kernel(x_ref, *refs):
        o_ref = refs[-1]                       # (bb,1,Ctot) or (bb,1,L*Ctot), f32
        bb, L, cin0 = x_ref.shape
        act2d = x_ref[...].reshape(bb * L, cin0)        # bf16 operand

        act3 = None
        for layer in range(num_layers):
            w_ref = refs[2 * layer]            # (maxK, Cin, Ctot) bf16 combined taps
            b_ref = refs[2 * layer + 1]        # (1, Ctot) f32
            max_k, cin, ctot = w_ref.shape

            acc = None
            for s in range(max_k):
                # Matmul on the UNSHIFTED activation (no relayout of the wide
                # input); f32 accumulation on the MXU.
                y = jnp.dot(act2d, w_ref[s],
                            preferred_element_type=jnp.float32)      # (bb*L, Ctot)
                y3 = y.reshape(bb, L, ctot)
                if s > 0:
                    # Causal shift applied to the NARROW result:
                    #   out[t] += x[t-s] @ W[s]   (zeros for t < s)
                    y3 = jnp.concatenate(
                        [jnp.zeros((bb, s, ctot), jnp.float32), y3[:, :L - s, :]],
                        axis=1)
                acc = y3 if acc is None else acc + y3

            # bias + ReLU once on the combined accumulator (f32)
            act3 = jnp.maximum(acc + b_ref[...], 0.0)                # (bb, L, Ctot)
            # bf16 operand for the next layer's matmuls
            act2d = act3.reshape(bb * L, ctot).astype(jnp.bfloat16)

        if max_pool:
            # time max-pool fused into the epilogue (never hits HBM as (B,L,C))
            o_ref[...] = jnp.max(act3, axis=1, keepdims=True)        # (bb,1,Ctot)
        else:
            # lane-dense store: L*Ctot lanes (128 at module sizes) -> unmasked vst
            o_ref[...] = act3.reshape(bb, 1, L * act3.shape[-1])

    return kernel


# ----------------------------------------------------------------------------
# Wrapper
# ----------------------------------------------------------------------------
@functools.partial(jax.jit, static_argnames=("num_layers", "max_pool"))
def cnn_forward(x_ncw, packed_params, *, num_layers, max_pool):
    """x_ncw: (B, 768, L).  Returns (B, Ctot) if max_pool else (B, Ctot, L)."""
    B, cin0, L = x_ncw.shape
    ctot = packed_params[-1][1].shape[-1]

    # Single NCW -> NLC transpose; cast the MXU operand to bf16.
    x_nlc = jnp.transpose(x_ncw, (0, 2, 1)).astype(jnp.bfloat16)     # (B, L, Cin0)

    # Batch block: aim for bb*L >= 128 MXU rows, capped at B (test sizes ->
    # bb=B, grid=(1,)).  For large B this yields multiple "parallel" grid
    # steps so v7x's two TensorCores each take a share.
    bb = min(B, max(1, (128 + L - 1) // L))
    B_pad = ((B + bb - 1) // bb) * bb
    if B_pad != B:
        x_nlc = jnp.pad(x_nlc, ((0, B_pad - B), (0, 0), (0, 0)))     # zero pad (safe)
    grid = (B_pad // bb,)

    flat = []
    in_specs = [pl.BlockSpec((bb, L, cin0), lambda i: (i, 0, 0))]
    for (W, b) in packed_params:
        flat.extend([W, b])
        in_specs.append(pl.BlockSpec(W.shape, lambda i: (0, 0, 0)))  # resident
        in_specs.append(pl.BlockSpec(b.shape, lambda i: (0, 0)))

    if max_pool:
        out_shape = jax.ShapeDtypeStruct((B_pad, 1, ctot), jnp.float32)
        out_spec = pl.BlockSpec((bb, 1, ctot), lambda i: (i, 0, 0))
        out_elems = bb * ctot
    else:
        out_shape = jax.ShapeDtypeStruct((B_pad, 1, L * ctot), jnp.float32)
        out_spec = pl.BlockSpec((bb, 1, L * ctot), lambda i: (i, 0, 0))
        out_elems = bb * L * ctot

    # VMEM budget from the actual block sizes (double-buffered in/out blocks,
    # resident packed weights, working-set slack), with a safe floor/cap.
    in_bytes = bb * L * cin0 * 2                                     # bf16 input block
    out_bytes = out_elems * 4                                        # f32 output block
    w_bytes = sum(int(np.prod(W.shape)) * 2 + int(np.prod(b.shape)) * 4
                  for (W, b) in packed_params)
    slack = 4 * bb * L * max(cin0, ctot) * 4                         # in-kernel temps
    vmem_limit = int(min(64 * 1024 * 1024,
                         max(8 * 1024 * 1024,
                             2 * (in_bytes + out_bytes) + w_bytes + slack)))

    out = pl.pallas_call(
        make_fused_kernel(num_layers, max_pool),
        out_shape=out_shape,
        grid_spec=pltpu.PrefetchScalarGridSpec(
            num_scalar_prefetch=0,
            grid=grid,
            in_specs=in_specs,
            out_specs=out_spec),
        compiler_params=pltpu.CompilerParams(
            dimension_semantics=("parallel",),           # megacore on v7x
            vmem_limit_bytes=vmem_limit),
    )(x_nlc, *flat)

    if max_pool:
        return out[:B, 0, :]                             # (B, Ctot)
    out = out[:B].reshape(B, L, ctot)                    # lane-dense slab -> NLC
    # NLC -> NCW only to match the PyTorch module's return layout; a consumer
    # that accepts (B, L, Ctot) should skip this transpose.
    return jnp.transpose(out, (0, 2, 1))


# ----------------------------------------------------------------------------
# Pure-JAX reference (silent correctness check, f32 end-to-end)
# ----------------------------------------------------------------------------
def reference_forward(x_ncw, torch_params, *, filters, num_layers, max_pool):
    act = x_ncw
    for layer in range(num_layers):
        outs = []
        for j, K in enumerate(filters):
            w, b = torch_params[layer][j]                # (Cout, Cin, K), (Cout,)
            y = jax.lax.conv_general_dilated(
                act, w, window_strides=(1,), padding=[(K - 1, 0)],
                dimension_numbers=("NCH", "OIH", "NCH"))
            y = y + b[None, :, None]
            outs.append(y)
        act = jax.nn.relu(jnp.concatenate(outs, axis=1))
    if max_pool:
        return jnp.max(act, axis=-1)
    return act


# ----------------------------------------------------------------------------
# Main
# ----------------------------------------------------------------------------
if __name__ == "__main__":
    # args: num_layers=2, filters=(2, 3), filter_num=8, cuda=False
    num_layers = 2
    filters = (2, 3)
    filter_num = 8

    B, L = 2, 8
    in0 = 768                                   # fixed by the module
    cin_next = filter_num * len(filters)        # 16

    key = jax.random.PRNGKey(0)
    key, xk = jax.random.split(key)
    x = jax.random.normal(xk, (B, in0, L), dtype=jnp.float32)

    # Deterministic parameter init (PyTorch Conv1d weight layout: (Cout,Cin,K))
    torch_params = []
    for layer in range(num_layers):
        cin = in0 if layer == 0 else cin_next
        tlayer = []
        for K in filters:
            key, wk, bk = jax.random.split(key, 3)
            w = 0.05 * jax.random.normal(wk, (filter_num, cin, K),
                                         dtype=jnp.float32)
            b = 0.05 * jax.random.normal(bk, (filter_num,), dtype=jnp.float32)
            tlayer.append((w, b))
        torch_params.append(tuple(tlayer))

    packed = tuple(pack_layer(torch_params[layer], filters, filter_num)
                   for layer in range(num_layers))

    # bf16 operands vs. f32 reference -> loosened tolerance (per review).
    TOL = dict(atol=5e-2, rtol=5e-2)

    # max-pool path (matches CNN(..., max_pool_over_time=True))
    out_pool = cnn_forward(x, packed, num_layers=num_layers, max_pool=True)
    out_pool = jax.block_until_ready(out_pool)
    ref_pool = reference_forward(x, torch_params, filters=filters,
                                 num_layers=num_layers, max_pool=True)
    assert out_pool.shape == ref_pool.shape
    assert np.allclose(np.asarray(out_pool), np.asarray(ref_pool), **TOL)

    # no-pool path (matches default CNN(...))
    out_full = cnn_forward(x, packed, num_layers=num_layers, max_pool=False)
    out_full = jax.block_until_ready(out_full)
    ref_full = reference_forward(x, torch_params, filters=filters,
                                 num_layers=num_layers, max_pool=False)
    assert out_full.shape == ref_full.shape
    assert np.allclose(np.asarray(out_full), np.asarray(ref_full), **TOL)

    print("KERNEL_OK")
</pallas_src>

<mosaic_0001>
module attributes {stable_mosaic.version = 11 : i64} {
  func.func @kernel(%arg0: i32, %arg1: memref<2x8x768xbf16, #tpu.memory_space<vmem>>, %arg2: memref<3x768x16xbf16, #tpu.memory_space<vmem>>, %arg3: memref<1x16xf32, #tpu.memory_space<vmem>>, %arg4: memref<3x16x16xbf16, #tpu.memory_space<vmem>>, %arg5: memref<1x16xf32, #tpu.memory_space<vmem>>, %arg6: memref<2x1x16xf32, #tpu.memory_space<vmem>>) attributes {dimension_semantics = [#tpu.dimension_semantics<parallel>], iteration_bounds = array<i64: 1>, scalar_prefetch = 0 : i64, scratch_operands = 0 : i64, tpu.core_type = #tpu.core_type<tc>, window_params = [{transform_indices = @transform_0, window_bounds = array<i64: 2, 8, 768>}, {pipeline_mode = #tpu.pipeline_mode<synchronous>, transform_indices = @transform_1, window_bounds = array<i64: 3, 768, 16>}, {pipeline_mode = #tpu.pipeline_mode<synchronous>, transform_indices = @transform_2, window_bounds = array<i64: 1, 16>}, {pipeline_mode = #tpu.pipeline_mode<synchronous>, transform_indices = @transform_3, window_bounds = array<i64: 3, 16, 16>}, {pipeline_mode = #tpu.pipeline_mode<synchronous>, transform_indices = @transform_4, window_bounds = array<i64: 1, 16>}, {transform_indices = @transform_5, window_bounds = array<i64: 2, 1, 16>}]} {
    %c0 = arith.constant 0 : index
    %c0_0 = arith.constant 0 : index
    %c0_1 = arith.constant 0 : index
    %0 = vector.load %arg1[%c0, %c0_0, %c0_1] : memref<2x8x768xbf16, #tpu.memory_space<vmem>>, vector<2x8x768xbf16>
    %1 = vector.shape_cast %0 : vector<2x8x768xbf16> to vector<16x768xbf16>
    %c0_2 = arith.constant 0 : index
    %c0_3 = arith.constant 0 : index
    %c0_4 = arith.constant 0 : index
    %2 = vector.load %arg2[%c0_2, %c0_3, %c0_4] : memref<3x768x16xbf16, #tpu.memory_space<vmem>>, vector<1x768x16xbf16>
    %3 = vector.shape_cast %2 : vector<1x768x16xbf16> to vector<768x16xbf16>
    %cst = arith.constant dense<0.000000e+00> : vector<16x16xf32>
    %4 = tpu.matmul %1, %3, %cst {dimension_numbers = #tpu.dot_dimension_numbers<[1], [0], [0], [1], [0, 0, 1, 1], [], []>} : vector<16x768xbf16>, vector<768x16xbf16>, vector<16x16xf32> -> vector<16x16xf32>
    %5 = vector.shape_cast %4 : vector<16x16xf32> to vector<2x8x16xf32>
    %c1 = arith.constant 1 : index
    %c0_5 = arith.constant 0 : index
    %c0_6 = arith.constant 0 : index
    %6 = vector.load %arg2[%c1, %c0_5, %c0_6] : memref<3x768x16xbf16, #tpu.memory_space<vmem>>, vector<1x768x16xbf16>
    %7 = vector.shape_cast %6 : vector<1x768x16xbf16> to vector<768x16xbf16>
    %cst_7 = arith.constant dense<0.000000e+00> : vector<16x16xf32>
    %8 = tpu.matmul %1, %7, %cst_7 {dimension_numbers = #tpu.dot_dimension_numbers<[1], [0], [0], [1], [0, 0, 1, 1], [], []>} : vector<16x768xbf16>, vector<768x16xbf16>, vector<16x16xf32> -> vector<16x16xf32>
    %9 = vector.shape_cast %8 : vector<16x16xf32> to vector<2x8x16xf32>
    %cst_8 = arith.constant 0.000000e+00 : f32
    %10 = vector.broadcast %cst_8 : f32 to vector<2x1x16xf32>
    %11 = vector.extract_strided_slice %9 {offsets = [0, 0, 0], sizes = [2, 7, 16], strides = [1, 1, 1]} : vector<2x8x16xf32> to vector<2x7x16xf32>
    %12 = tpu.concatenate %10, %11 in 1 : vector<2x1x16xf32>, vector<2x7x16xf32> -> vector<2x8x16xf32>
    %13 = arith.addf %5, %12 : vector<2x8x16xf32>
    %c2 = arith.constant 2 : index
    %c0_9 = arith.constant 0 : index
    %c0_10 = arith.constant 0 : index
    %14 = vector.load %arg2[%c2, %c0_9, %c0_10] : memref<3x768x16xbf16, #tpu.memory_space<vmem>>, vector<1x768x16xbf16>
    %15 = vector.shape_cast %14 : vector<1x768x16xbf16> to vector<768x16xbf16>
    %cst_11 = arith.constant dense<0.000000e+00> : vector<16x16xf32>
    %16 = tpu.matmul %1, %15, %cst_11 {dimension_numbers = #tpu.dot_dimension_numbers<[1], [0], [0], [1], [0, 0, 1, 1], [], []>} : vector<16x768xbf16>, vector<768x16xbf16>, vector<16x16xf32> -> vector<16x16xf32>
    %17 = vector.shape_cast %16 : vector<16x16xf32> to vector<2x8x16xf32>
    %cst_12 = arith.constant 0.000000e+00 : f32
    %18 = vector.broadcast %cst_12 : f32 to vector<2x2x16xf32>
    %19 = vector.extract_strided_slice %17 {offsets = [0, 0, 0], sizes = [2, 6, 16], strides = [1, 1, 1]} : vector<2x8x16xf32> to vector<2x6x16xf32>
    %20 = tpu.concatenate %18, %19 in 1 : vector<2x2x16xf32>, vector<2x6x16xf32> -> vector<2x8x16xf32>
    %21 = arith.addf %13, %20 : vector<2x8x16xf32>
    %c0_13 = arith.constant 0 : index
    %c0_14 = arith.constant 0 : index
    %22 = vector.load %arg3[%c0_13, %c0_14] : memref<1x16xf32, #tpu.memory_space<vmem>>, vector<1x16xf32>
    %23 = vector.shape_cast %22 : vector<1x16xf32> to vector<1x1x16xf32>
    %24 = vector.broadcast %23 : vector<1x1x16xf32> to vector<2x8x16xf32>
    %25 = arith.addf %21, %24 : vector<2x8x16xf32>
    %cst_15 = arith.constant 0.000000e+00 : f32
    %26 = vector.broadcast %cst_15 : f32 to vector<2x8x16xf32>
    %27 = arith.maximumf %25, %26 : vector<2x8x16xf32>
    %28 = vector.shape_cast %27 : vector<2x8x16xf32> to vector<16x16xf32>
    %29 = arith.truncf %28 : vector<16x16xf32> to vector<16x16xbf16>
    %c0_16 = arith.constant 0 : index
    %c0_17 = arith.constant 0 : index
    %c0_18 = arith.constant 0 : index
    %30 = vector.load %arg4[%c0_16, %c0_17, %c0_18] : memref<3x16x16xbf16, #tpu.memory_space<vmem>>, vector<1x16x16xbf16>
    %31 = vector.shape_cast %30 : vector<1x16x16xbf16> to vector<16x16xbf16>
    %cst_19 = arith.constant dense<0.000000e+00> : vector<16x16xf32>
    %32 = tpu.matmul %29, %31, %cst_19 {dimension_numbers = #tpu.dot_dimension_numbers<[1], [0], [0], [1], [0, 0, 1, 1], [], []>} : vector<16x16xbf16>, vector<16x16xbf16>, vector<16x16xf32> -> vector<16x16xf32>
    %33 = vector.shape_cast %32 : vector<16x16xf32> to vector<2x8x16xf32>
    %c1_20 = arith.constant 1 : index
    %c0_21 = arith.constant 0 : index
    %c0_22 = arith.constant 0 : index
    %34 = vector.load %arg4[%c1_20, %c0_21, %c0_22] : memref<3x16x16xbf16, #tpu.memory_space<vmem>>, vector<1x16x16xbf16>
    %35 = vector.shape_cast %34 : vector<1x16x16xbf16> to vector<16x16xbf16>
    %cst_23 = arith.constant dense<0.000000e+00> : vector<16x16xf32>
    %36 = tpu.matmul %29, %35, %cst_23 {dimension_numbers = #tpu.dot_dimension_numbers<[1], [0], [0], [1], [0, 0, 1, 1], [], []>} : vector<16x16xbf16>, vector<16x16xbf16>, vector<16x16xf32> -> vector<16x16xf32>
    %37 = vector.shape_cast %36 : vector<16x16xf32> to vector<2x8x16xf32>
    %cst_24 = arith.constant 0.000000e+00 : f32
    %38 = vector.broadcast %cst_24 : f32 to vector<2x1x16xf32>
    %39 = vector.extract_strided_slice %37 {offsets = [0, 0, 0], sizes = [2, 7, 16], strides = [1, 1, 1]} : vector<2x8x16xf32> to vector<2x7x16xf32>
    %40 = tpu.concatenate %38, %39 in 1 : vector<2x1x16xf32>, vector<2x7x16xf32> -> vector<2x8x16xf32>
    %41 = arith.addf %33, %40 : vector<2x8x16xf32>
    %c2_25 = arith.constant 2 : index
    %c0_26 = arith.constant 0 : index
    %c0_27 = arith.constant 0 : index
    %42 = vector.load %arg4[%c2_25, %c0_26, %c0_27] : memref<3x16x16xbf16, #tpu.memory_space<vmem>>, vector<1x16x16xbf16>
    %43 = vector.shape_cast %42 : vector<1x16x16xbf16> to vector<16x16xbf16>
    %cst_28 = arith.constant dense<0.000000e+00> : vector<16x16xf32>
    %44 = tpu.matmul %29, %43, %cst_28 {dimension_numbers = #tpu.dot_dimension_numbers<[1], [0], [0], [1], [0, 0, 1, 1], [], []>} : vector<16x16xbf16>, vector<16x16xbf16>, vector<16x16xf32> -> vector<16x16xf32>
    %45 = vector.shape_cast %44 : vector<16x16xf32> to vector<2x8x16xf32>
    %cst_29 = arith.constant 0.000000e+00 : f32
    %46 = vector.broadcast %cst_29 : f32 to vector<2x2x16xf32>
    %47 = vector.extract_strided_slice %45 {offsets = [0, 0, 0], sizes = [2, 6, 16], strides = [1, 1, 1]} : vector<2x8x16xf32> to vector<2x6x16xf32>
    %48 = tpu.concatenate %46, %47 in 1 : vector<2x2x16xf32>, vector<2x6x16xf32> -> vector<2x8x16xf32>
    %49 = arith.addf %41, %48 : vector<2x8x16xf32>
    %c0_30 = arith.constant 0 : index
    %c0_31 = arith.constant 0 : index
    %50 = vector.load %arg5[%c0_30, %c0_31] : memref<1x16xf32, #tpu.memory_space<vmem>>, vector<1x16xf32>
    %51 = vector.shape_cast %50 : vector<1x16xf32> to vector<1x1x16xf32>
    %52 = vector.broadcast %51 : vector<1x1x16xf32> to vector<2x8x16xf32>
    %53 = arith.addf %49, %52 : vector<2x8x16xf32>
    %cst_32 = arith.constant 0.000000e+00 : f32
    %54 = vector.broadcast %cst_32 : f32 to vector<2x8x16xf32>
    %55 = arith.maximumf %53, %54 : vector<2x8x16xf32>
    %cst_33 = arith.constant dense<0xFF800000> : vector<2x16xf32>
    %56 = vector.multi_reduction <maximumf>, %55, %cst_33 [1] : vector<2x8x16xf32> to vector<2x16xf32>
    %57 = vector.shape_cast %56 : vector<2x16xf32> to vector<2x1x16xf32>
    %c0_34 = arith.constant 0 : index
    %c0_35 = arith.constant 0 : index
    %c0_36 = arith.constant 0 : index
    %58 = vector.load %arg6[%c0_34, %c0_35, %c0_36] : memref<2x1x16xf32, #tpu.memory_space<vmem>>, vector<2x1x16xf32>
    tpu.vector_store %arg6[%c0_34, %c0_35, %c0_36], %57 {strides = array<i32>} : memref<2x1x16xf32, #tpu.memory_space<vmem>>, vector<2x1x16xf32>,
    return
  }
  func.func @transform_0(%arg0: i32) -> (i32, i32, i32) {
    %c0_i32 = arith.constant 0 : i32
    %c0_i32_0 = arith.constant 0 : i32
    %c0_i32_1 = arith.constant 0 : i32
    return %arg0, %c0_i32, %c0_i32_0 : i32, i32, i32
  }
  func.func @transform_1(%arg0: i32) -> (i32, i32, i32) {
    %c0_i32 = arith.constant 0 : i32
    %c0_i32_0 = arith.constant 0 : i32
    %c0_i32_1 = arith.constant 0 : i32
    %c0_i32_2 = arith.constant 0 : i32
    return %c0_i32, %c0_i32_0, %c0_i32_1 : i32, i32, i32
  }
  func.func @transform_2(%arg0: i32) -> (i32, i32) {
    %c0_i32 = arith.constant 0 : i32
    %c0_i32_0 = arith.constant 0 : i32
    %c0_i32_1 = arith.constant 0 : i32
    return %c0_i32, %c0_i32_0 : i32, i32
  }
  func.func @transform_3(%arg0: i32) -> (i32, i32, i32) {
    %c0_i32 = arith.constant 0 : i32
    %c0_i32_0 = arith.constant 0 : i32
    %c0_i32_1 = arith.constant 0 : i32
    %c0_i32_2 = arith.constant 0 : i32
    return %c0_i32, %c0_i32_0, %c0_i32_1 : i32, i32, i32
  }
  func.func @transform_4(%arg0: i32) -> (i32, i32) {
    %c0_i32 = arith.constant 0 : i32
    %c0_i32_0 = arith.constant 0 : i32
    %c0_i32_1 = arith.constant 0 : i32
    return %c0_i32, %c0_i32_0 : i32, i32
  }
  func.func @transform_5(%arg0: i32) -> (i32, i32, i32) {
    %c0_i32 = arith.constant 0 : i32
    %c0_i32_0 = arith.constant 0 : i32
    %c0_i32_1 = arith.constant 0 : i32
    return %arg0, %c0_i32, %c0_i32_0 : i32, i32, i32
  }
}

</mosaic_0001>

<bundles_post_ra>
// kernel: cnn_forward.1
= control target key start
LH: loop header
LB: loop body
LE: loop exit
PB: predicated region body
PF: predicated region fallthrough
CT: control target
= control target key end

     0   :  { %s3157_s0 = inlined_call_operand.vmem [shape: bf16[2,8,768], index: 0, kind: input, shape index: {}]   ;;  %s3158_s1 = inlined_call_operand.vmem [shape: bf16[3,768,16], index: 1, kind: input, shape index: {}]   ;;  %s3159_s2 = inlined_call_operand.vmem [shape: f32[1,16], index: 2, kind: input, shape index: {}]   ;;  %s3160_s3 = inlined_call_operand.vmem [shape: bf16[3,16,16], index: 3, kind: input, shape index: {}]   ;;  %s3161_s4 = inlined_call_operand.vmem [shape: f32[1,16], index: 4, kind: input, shape index: {}]   ;;  %s3162_s5 = inlined_call_operand.hbm [shape: f32[2,1,16], index: 5, kind: output, shape index: {}]  }
   0x1   :  { %v2413_v0 = vld [vmem:[%s3158_s1 + $0x40] sm:$0xff]   ;;  %v2417_v4 = vld [vmem:[%s3158_s1 + $0x48] sm:$0xff]   ;;  %v2421_v8 = vld [vmem:[%s3158_s1 + $0x50] sm:$0xff]  }
   0x2   :  { %v2414_v1 = vld [vmem:[%s3158_s1 + $0xc0] sm:$0xff]   ;;  %2186 = vmatprep.subr.bf16.mxu0 %v2413_v0  ;;  %v2418_v5 = vld [vmem:[%s3158_s1 + $0xc8] sm:$0xff]   ;;  %v2422_v9 = vld [vmem:[%s3158_s1 + $0xd0] sm:$0xff]  }
   0x3   :  { %v2415_v2 = vld [vmem:[%s3158_s1] sm:$0xff]   ;;  %2208 = vmatprep.subr.bf16.mxu1 %v2414_v1  ;;  %v2419_v6 = vld [vmem:[%s3158_s1 + $0x8] sm:$0xff]   ;;  %v2423_v10 = vld [vmem:[%s3158_s1 + $0x10] sm:$0xff]  }
   0x4   :  { %v2416_v3 = vld [vmem:[%s3158_s1 + $0x80] sm:$0xff]   ;;  %2187 = vmatpush3.bf16.msra.mxu0 %v2415_v2  ;;  %v2420_v7 = vld [vmem:[%s3158_s1 + $0x88] sm:$0xff]   ;;  %v2424_v11 = vld [vmem:[%s3158_s1 + $0x90] sm:$0xff]  }
   0x5   :  { %2209 = vmatpush3.bf16.msra.mxu1 %v2416_v3  ;;  %2188 = vmatprep.subr.bf16.mxu0 %v2417_v4  ;;  %v2425_v12 = vld [vmem:[%s3158_s1 + $0x58] sm:$0xff]   ;;  %v2429_v16 = vld [vmem:[%s3158_s1 + $0x60] sm:$0xff]   ;;  %v2433_v20 = vld [vmem:[%s3158_s1 + $0x68] sm:$0xff]  }
   0x6   :  { %2210 = vmatprep.subr.bf16.mxu1 %v2418_v5  ;;  %v2426_v13 = vld [vmem:[%s3158_s1 + $0xd8] sm:$0xff]   ;;  %v2430_v17 = vld [vmem:[%s3158_s1 + $0xe0] sm:$0xff]   ;;  %v2434_v21 = vld [vmem:[%s3158_s1 + $0xe8] sm:$0xff]  }
   0x7   :  { %v2427_v14 = vld [vmem:[%s3158_s1 + $0x18] sm:$0xff]   ;;  %v2431_v18 = vld [vmem:[%s3158_s1 + $0x20] sm:$0xff]   ;;  %v2435_v22 = vld [vmem:[%s3158_s1 + $0x28] sm:$0xff]  }
   0x8   :  { %2189 = vmatpush3.bf16.msra.mxu0 %v2419_v6  ;;  %v2428_v15 = vld [vmem:[%s3158_s1 + $0x98] sm:$0xff]   ;;  %v2432_v19 = vld [vmem:[%s3158_s1 + $0xa0] sm:$0xff]   ;;  %v2436_v23 = vld [vmem:[%s3158_s1 + $0xa8] sm:$0xff]  }
   0x9   :  { %2211 = vmatpush3.bf16.msra.mxu1 %v2420_v7  ;;  %2190 = vmatprep.subr.bf16.mxu0 %v2421_v8  ;;  %v2437_v24 = vld [vmem:[%s3158_s1 + $0x70] sm:$0xff]   ;;  %v2441_v28 = vld [vmem:[%s3158_s1 + $0x78] sm:$0xff]   ;;  %v2732_v33 = vld [vmem:[%s3157_s0 + $0xc] ss:$24 sps:$4 sm:$0xff]  }
   0xa   :  { %2212 = vmatprep.subr.bf16.mxu1 %v2422_v9  ;;  %v2438_v25 = vld [vmem:[%s3158_s1 + $0xf0] sm:$0xff]   ;;  %v2442_v29 = vld [vmem:[%s3158_s1 + $0xf8] sm:$0xff]   ;;  %v2743_v35 = vld [vmem:[%s3157_s0 + $0x8] ss:$24 sps:$4 sm:$0xff]   ;;  %515 = vmatprep.mubr.bf16.mxu1 %v2732_v33 }
   0xb   :  { %v2439_v26 = vld [vmem:[%s3158_s1 + $0x30] sm:$0xff]   ;;  %v2443_v30 = vld [vmem:[%s3158_s1 + $0x38] sm:$0xff]   ;;  %v2451_v36 = vld [vmem:[%s3158_s1 + $0x140] sm:$0xff]  }
   0xc   :  { %2191 = vmatpush3.bf16.msra.mxu0 %v2423_v10  ;;  %v2440_v27 = vld [vmem:[%s3158_s1 + $0xb0] sm:$0xff]   ;;  %v2444_v31 = vld [vmem:[%s3158_s1 + $0xb8] sm:$0xff]   ;;  %v2452_v37 = vld [vmem:[%s3158_s1 + $0x1c0] sm:$0xff]  }
   0xd   :  { %2213 = vmatpush3.bf16.msra.mxu1 %v2424_v11  ;;  %2192 = vmatprep.subr.bf16.mxu0 %v2425_v12  ;;  %v2727_v32 = vld [vmem:[%s3157_s0 + $0x4] ss:$24 sps:$4 sm:$0xff]   ;;  %v2738_v34 = vld [vmem:[%s3157_s0] ss:$24 sps:$4 sm:$0xff]   ;;  %v2455_v40 = vld [vmem:[%s3158_s1 + $0x148] sm:$0xff]  }
   0xe   :  { %2214 = vmatprep.subr.bf16.mxu1 %v2426_v13  ;;  %474 = vmatprep.mubr.bf16.mxu0 %v2727_v32  ;;  %v2453_v38 = vld [vmem:[%s3158_s1 + $0x100] sm:$0xff]   ;;  %v2456_v41 = vld [vmem:[%s3158_s1 + $0x1c8] sm:$0xff]   ;;  %v2459_v44 = vld [vmem:[%s3158_s1 + $0x150] sm:$0xff]  }
   0xf   :  { %v2454_v39 = vld [vmem:[%s3158_s1 + $0x180] sm:$0xff]   ;;  %v2457_v42 = vld [vmem:[%s3158_s1 + $0x108] sm:$0xff]   ;;  %v2460_v45 = vld [vmem:[%s3158_s1 + $0x1d0] sm:$0xff]  }
  0x10   :  { %2193 = vmatpush3.bf16.msra.mxu0 %v2427_v14  ;;  %v2458_v43 = vld [vmem:[%s3158_s1 + $0x188] sm:$0xff]   ;;  %v2461_v46 = vld [vmem:[%s3158_s1 + $0x110] sm:$0xff]   ;;  %v2463_v48 = vld [vmem:[%s3158_s1 + $0x158] sm:$0xff]  }
  0x11   :  { %2215 = vmatpush3.bf16.msra.mxu1 %v2428_v15  ;;  %2194 = vmatprep.subr.bf16.mxu0 %v2429_v16  ;;  %v2462_v47 = vld [vmem:[%s3158_s1 + $0x190] sm:$0xff]   ;;  %v2464_v49 = vld [vmem:[%s3158_s1 + $0x1d8] sm:$0xff]   ;;  %v2467_v52 = vld [vmem:[%s3158_s1 + $0x160] sm:$0xff]  }
  0x12   :  { %2216 = vmatprep.subr.bf16.mxu1 %v2430_v17  ;;  %v2465_v50 = vld [vmem:[%s3158_s1 + $0x118] sm:$0xff]   ;;  %v2468_v53 = vld [vmem:[%s3158_s1 + $0x1e0] sm:$0xff]   ;;  %v2471_v56 = vld [vmem:[%s3158_s1 + $0x168] sm:$0xff]  }
  0x13   :  { %v2466_v51 = vld [vmem:[%s3158_s1 + $0x198] sm:$0xff]   ;;  %v2469_v54 = vld [vmem:[%s3158_s1 + $0x120] sm:$0xff]   ;;  %v2472_v57 = vld [vmem:[%s3158_s1 + $0x1e8] sm:$0xff]  }
  0x14   :  { %2195 = vmatpush3.bf16.msra.mxu0 %v2431_v18  ;;  %v2470_v55 = vld [vmem:[%s3158_s1 + $0x1a0] sm:$0xff]   ;;  %v2473_v58 = vld [vmem:[%s3158_s1 + $0x128] sm:$0xff]   ;;  %v2475_v60 = vld [vmem:[%s3158_s1 + $0x170] sm:$0xff]  }
  0x15   :  { %2217 = vmatpush3.bf16.msra.mxu1 %v2432_v19  ;;  %2196 = vmatprep.subr.bf16.mxu0 %v2433_v20  ;;  %v2474_v59 = vld [vmem:[%s3158_s1 + $0x1a8] sm:$0xff]   ;;  %v2476_v61 = vld [vmem:[%s3158_s1 + $0x1f0] sm:$0xff]   ;;  %v2479_v0 = vld [vmem:[%s3158_s1 + $0x178] sm:$0xff]  }
  0x16   :  { %2218 = vmatprep.subr.bf16.mxu1 %v2434_v21  ;;  %v2477_v62 = vld [vmem:[%s3158_s1 + $0x130] sm:$0xff]   ;;  %v2480_v1 = vld [vmem:[%s3158_s1 + $0x1f8] sm:$0xff]   ;;  %v2486_v6 = vld [vmem:[%s3158_s1 + $0x240] sm:$0xff]  }
  0x17   :  { %v2478_v63 = vld [vmem:[%s3158_s1 + $0x1b0] sm:$0xff]   ;;  %v2481_v2 = vld [vmem:[%s3158_s1 + $0x138] sm:$0xff]   ;;  %v2487_v7 = vld [vmem:[%s3158_s1 + $0x2c0] sm:$0xff]  }
  0x18   :  { %2197 = vmatpush3.bf16.msra.mxu0 %v2435_v22  ;;  %v2482_v3 = vld [vmem:[%s3158_s1 + $0x1b8] sm:$0xff]   ;;  %v2848_v4 = vld [vmem:[%s3157_s0 + $0x10] ss:$24 sps:$4 sm:$0xff]   ;;  %v2853_v5 = vld [vmem:[%s3157_s0 + $0x14] ss:$24 sps:$4 sm:$0xff]  }
  0x19   :  { %2219 = vmatpush3.bf16.msra.mxu1 %v2436_v23  ;;  %2198 = vmatprep.subr.bf16.mxu0 %v2437_v24  ;;  %v2488_v8 = vld [vmem:[%s3158_s1 + $0x200] sm:$0xff]   ;;  %v2490_v10 = vld [vmem:[%s3158_s1 + $0x248] sm:$0xff]   ;;  %v2494_v14 = vld [vmem:[%s3158_s1 + $0x250] sm:$0xff]  }
  0x1a   :  { %2220 = vmatprep.subr.bf16.mxu1 %v2438_v25  ;;  %v2489_v9 = vld [vmem:[%s3158_s1 + $0x280] sm:$0xff]   ;;  %v2491_v11 = vld [vmem:[%s3158_s1 + $0x2c8] sm:$0xff]   ;;  %v2495_v15 = vld [vmem:[%s3158_s1 + $0x2d0] sm:$0xff]  }
  0x1b   :  { %v2492_v12 = vld [vmem:[%s3158_s1 + $0x208] sm:$0xff]   ;;  %v2496_v16 = vld [vmem:[%s3158_s1 + $0x210] sm:$0xff]   ;;  %v2498_v18 = vld [vmem:[%s3158_s1 + $0x258] sm:$0xff]  }
  0x1c   :  { %2199 = vmatpush3.bf16.msra.mxu0 %v2439_v26  ;;  %v2493_v13 = vld [vmem:[%s3158_s1 + $0x288] sm:$0xff]   ;;  %v2497_v17 = vld [vmem:[%s3158_s1 + $0x290] sm:$0xff]   ;;  %v2499_v19 = vld [vmem:[%s3158_s1 + $0x2d8] sm:$0xff]  }
  0x1d   :  { %2221 = vmatpush3.bf16.msra.mxu1 %v2440_v27  ;;  %2200 = vmatprep.subr.bf16.mxu0 %v2441_v28  ;;  %v2500_v20 = vld [vmem:[%s3158_s1 + $0x218] sm:$0xff]   ;;  %v2502_v22 = vld [vmem:[%s3158_s1 + $0x260] sm:$0xff]   ;;  %v2506_v26 = vld [vmem:[%s3158_s1 + $0x268] sm:$0xff]  }
  0x1e   :  { %2222 = vmatprep.subr.bf16.mxu1 %v2442_v29  ;;  %v2501_v21 = vld [vmem:[%s3158_s1 + $0x298] sm:$0xff]   ;;  %v2503_v23 = vld [vmem:[%s3158_s1 + $0x2e0] sm:$0xff]   ;;  %v2507_v27 = vld [vmem:[%s3158_s1 + $0x2e8] sm:$0xff]  }
  0x1f   :  { %v2504_v24 = vld [vmem:[%s3158_s1 + $0x220] sm:$0xff]   ;;  %v2508_v28 = vld [vmem:[%s3158_s1 + $0x228] sm:$0xff]  }
  0x20   :  { %2201 = vmatpush3.bf16.msra.mxu0 %v2443_v30  ;;  %v2505_v25 = vld [vmem:[%s3158_s1 + $0x2a0] sm:$0xff]   ;;  %v2509_v29 = vld [vmem:[%s3158_s1 + $0x2a8] sm:$0xff]   ;;  %v2510_v30 = vld [vmem:[%s3158_s1 + $0x270] sm:$0xff]  }
  0x21   :  { %2223 = vmatpush3.bf16.msra.mxu1 %v2444_v31  ;;  %2230 = vmatprep.subr.bf16.mxu0 %v2451_v36  ;;  %v2511_v31 = vld [vmem:[%s3158_s1 + $0x2f0] sm:$0xff]  }
  0x22   :  { %2252 = vmatprep.subr.bf16.mxu1 %v2452_v37  ;;  %v2512_v36 = vld [vmem:[%s3158_s1 + $0x230] sm:$0xff]  }
  0x23   :  { %475 = vmatmul.mubr.bf16.vlgmr.msra.gmra.mrb[0].mxu0 %v2738_v34  ;;  %v2513_v37 = vld [vmem:[%s3158_s1 + $0x2b0] sm:$0xff]  }
  0x24   :  { %516 = vmatmul.mubr.bf16.vlgmr.msra.gmra.mrb[0].mxu1 %v2743_v35  ;;  %2231 = vmatpush3.bf16.msra.mxu0 %v2453_v38  ;;  %v2514_v38 = vld [vmem:[%s3158_s1 + $0x278] sm:$0xff]  }
  0x25   :  { %982 = vmatprep.mubr.bf16.mxu1 %v2727_v32  ;;  %2253 = vmatpush3.bf16.msra.mxu1 %v2454_v39  ;;  %v2515_v39 = vld [vmem:[%s3158_s1 + $0x2f8] sm:$0xff]  }
  0x26   :  { %2232 = vmatprep.subr.bf16.mxu0 %v2455_v40  ;;  %2254 = vmatprep.subr.bf16.mxu1 %v2456_v41  ;;  %v2516_v40 = vld [vmem:[%s3158_s1 + $0x238] sm:$0xff]  }
  0x27   :  { %556 = vmatprep.mubr.bf16.mxu0 %v2853_v5  ;;  %v2517_v41 = vld [vmem:[%s3158_s1 + $0x2b8] sm:$0xff]  }
  0x28   :  { %2233 = vmatpush3.bf16.msra.mxu0 %v2457_v42  ;;  %v2518_v42 = vld [vmem:[%s3158_s1 + $0x340] sm:$0xff]  }
  0x29   :  { %2255 = vmatpush3.bf16.msra.mxu1 %v2458_v43  ;;  %2234 = vmatprep.subr.bf16.mxu0 %v2459_v44  ;;  %v2519_v43 = vld [vmem:[%s3158_s1 + $0x3c0] sm:$0xff]  }
  0x2a   :  { %2256 = vmatprep.subr.bf16.mxu1 %v2460_v45  ;;  %v2520_v44 = vld [vmem:[%s3158_s1 + $0x300] sm:$0xff]  }
  0x2b   :  { %v2521_v45 = vld [vmem:[%s3158_s1 + $0x380] sm:$0xff]  }
  0x2c   :  { %2235 = vmatpush3.bf16.msra.mxu0 %v2461_v46  ;;  %v2522_v46 = vld [vmem:[%s3158_s1 + $0x348] sm:$0xff]  }
  0x2d   :  { %2257 = vmatpush3.bf16.msra.mxu1 %v2462_v47  ;;  %2236 = vmatprep.subr.bf16.mxu0 %v2463_v48  ;;  %v2523_v47 = vld [vmem:[%s3158_s1 + $0x3c8] sm:$0xff]  }
  0x2e   :  { %2258 = vmatprep.subr.bf16.mxu1 %v2464_v49  ;;  %v2524_v48 = vld [vmem:[%s3158_s1 + $0x308] sm:$0xff]  }
  0x2f   :  { %v2525_v49 = vld [vmem:[%s3158_s1 + $0x388] sm:$0xff]  }
  0x30   :  { %2237 = vmatpush3.bf16.msra.mxu0 %v2465_v50  ;;  %v2526_v50 = vld [vmem:[%s3158_s1 + $0x350] sm:$0xff]  }
  0x31   :  { %2259 = vmatpush3.bf16.msra.mxu1 %v2466_v51  ;;  %2238 = vmatprep.subr.bf16.mxu0 %v2467_v52  ;;  %v2529_v51 = vld [vmem:[%s3158_s1 + $0x390] sm:$0xff]   ;;  %v2530_v52 = vld [vmem:[%s3158_s1 + $0x358] sm:$0xff]  }
  0x32   :  { %2260 = vmatprep.subr.bf16.mxu1 %v2468_v53  ;;  %v2531_v53 = vld [vmem:[%s3158_s1 + $0x3d8] sm:$0xff]  }
  0x34   :  { %2239 = vmatpush3.bf16.msra.mxu0 %v2469_v54  ;;  %v2532_v54 = vld [vmem:[%s3158_s1 + $0x318] sm:$0xff]  }
  0x35   :  { %2261 = vmatpush3.bf16.msra.mxu1 %v2470_v55  ;;  %2240 = vmatprep.subr.bf16.mxu0 %v2471_v56  ;;  %v2533_v55 = vld [vmem:[%s3158_s1 + $0x398] sm:$0xff]   ;;  %v2534_v56 = vld [vmem:[%s3158_s1 + $0x360] sm:$0xff]  }
  0x36   :  { %2262 = vmatprep.subr.bf16.mxu1 %v2472_v57  ;;  %v2535_v57 = vld [vmem:[%s3158_s1 + $0x3e0] sm:$0xff]  }
  0x38   :  { %2241 = vmatpush3.bf16.msra.mxu0 %v2473_v58  ;;  %v2536_v58 = vld [vmem:[%s3158_s1 + $0x320] sm:$0xff]  }
  0x39   :  { %2263 = vmatpush3.bf16.msra.mxu1 %v2474_v59  ;;  %2242 = vmatprep.subr.bf16.mxu0 %v2475_v60  ;;  %v2537_v59 = vld [vmem:[%s3158_s1 + $0x3a0] sm:$0xff]   ;;  %v2538_v60 = vld [vmem:[%s3158_s1 + $0x368] sm:$0xff]  }
  0x3a   :  { %2264 = vmatprep.subr.bf16.mxu1 %v2476_v61  ;;  %v2539_v61 = vld [vmem:[%s3158_s1 + $0x3e8] sm:$0xff]  }
  0x3c   :  { %2243 = vmatpush3.bf16.msra.mxu0 %v2477_v62  ;;  %v2540_v62 = vld [vmem:[%s3158_s1 + $0x328] sm:$0xff]  }
  0x3d   :  { %2265 = vmatpush3.bf16.msra.mxu1 %v2478_v63  ;;  %2244 = vmatprep.subr.bf16.mxu0 %v2479_v0  ;;  %v2541_v63 = vld [vmem:[%s3158_s1 + $0x3a8] sm:$0xff]   ;;  %v2542_v0 = vld [vmem:[%s3158_s1 + $0x370] sm:$0xff]  }
  0x3e   :  { %2266 = vmatprep.subr.bf16.mxu1 %v2480_v1  ;;  %v2543_v1 = vld [vmem:[%s3158_s1 + $0x3f0] sm:$0xff]  }
  0x40   :  { %2245 = vmatpush3.bf16.msra.mxu0 %v2481_v2  ;;  %v2544_v2 = vld [vmem:[%s3158_s1 + $0x330] sm:$0xff]  }
  0x41   :  { %2267 = vmatpush3.bf16.msra.mxu1 %v2482_v3  ;;  %2274 = vmatprep.subr.bf16.mxu0 %v2486_v6  ;;  %v2545_v3 = vld [vmem:[%s3158_s1 + $0x3b0] sm:$0xff]   ;;  %v2546_v6 = vld [vmem:[%s3158_s1 + $0x378] sm:$0xff]  }
  0x42   :  { %2296 = vmatprep.subr.bf16.mxu1 %v2487_v7  ;;  %v2547_v7 = vld [vmem:[%s3158_s1 + $0x3f8] sm:$0xff]  }
  0x43   :  { %557 = vmatmul.mubr.bf16.vlgmr.msra.gmra.mrb[4].mxu0 %v2848_v4 }
  0x44   :  { %983 = vmatmul.mubr.bf16.vlgmr.msra.gmra.mrb[4].mxu1 %v2738_v34  ;;  %2275 = vmatpush3.bf16.msra.mxu0 %v2488_v8  ;;  %v2548_v8 = vld [vmem:[%s3158_s1 + $0x338] sm:$0xff]  }
  0x45   :  { %1023 = vmatprep.mubr.bf16.mxu0 %v2732_v33  ;;  %2297 = vmatpush3.bf16.msra.mxu1 %v2489_v9  ;;  %v2549_v9 = vld [vmem:[%s3158_s1 + $0x3b8] sm:$0xff]  }
  0x46   :  { %1064 = vmatprep.mubr.bf16.mxu1 %v2853_v5  ;;  %2276 = vmatprep.subr.bf16.mxu0 %v2490_v10  ;;  %v2550_v10 = vld [vmem:[%s3158_s1 + $0x440] sm:$0xff]  }
  0x47   :  { %2298 = vmatprep.subr.bf16.mxu1 %v2491_v11  ;;  %v2551_v11 = vld [vmem:[%s3158_s1 + $0x400] sm:$0xff]  }
  0x48   :  { %2277 = vmatpush3.bf16.msra.mxu0 %v2492_v12  ;;  %v2552_v12 = vld [vmem:[%s3158_s1 + $0x448] sm:$0xff]  }
  0x49   :  { %2299 = vmatpush3.bf16.msra.mxu1 %v2493_v13  ;;  %2278 = vmatprep.subr.bf16.mxu0 %v2494_v14  ;;  %v2553_v13 = vld [vmem:[%s3158_s1 + $0x408] sm:$0xff]   ;;  %v2554_v14 = vld [vmem:[%s3158_s1 + $0x450] sm:$0xff]  }
  0x4a   :  { %2300 = vmatprep.subr.bf16.mxu1 %v2495_v15  ;;  %v2555_v15 = vld [vmem:[%s3158_s1 + $0x410] sm:$0xff]  }
  0x4c   :  { %2279 = vmatpush3.bf16.msra.mxu0 %v2496_v16  ;;  %v2559_v16 = vld [vmem:[%s3158_s1 + $0x420] sm:$0xff]  }
  0x4d   :  { %2301 = vmatpush3.bf16.msra.mxu1 %v2497_v17  ;;  %2280 = vmatprep.subr.bf16.mxu0 %v2498_v18  ;;  %v2560_v17 = vld [vmem:[%s3158_s1 + $0x468] sm:$0xff]  }
  0x4e   :  { %2302 = vmatprep.subr.bf16.mxu1 %v2499_v19 }
  0x50   :  { %2281 = vmatpush3.bf16.msra.mxu0 %v2500_v20 }
  0x51   :  { %2303 = vmatpush3.bf16.msra.mxu1 %v2501_v21  ;;  %2282 = vmatprep.subr.bf16.mxu0 %v2502_v22 }
  0x52   :  { %2304 = vmatprep.subr.bf16.mxu1 %v2503_v23 }
  0x54   :  { %2283 = vmatpush3.bf16.msra.mxu0 %v2504_v24 }
  0x55   :  { %2305 = vmatpush3.bf16.msra.mxu1 %v2505_v25  ;;  %2284 = vmatprep.subr.bf16.mxu0 %v2506_v26 }
  0x56   :  { %2306 = vmatprep.subr.bf16.mxu1 %v2507_v27 }
  0x58   :  { %2285 = vmatpush3.bf16.msra.mxu0 %v2508_v28 }
  0x59   :  { %2307 = vmatpush3.bf16.msra.mxu1 %v2509_v29  ;;  %2286 = vmatprep.subr.bf16.mxu0 %v2510_v30 }
  0x5a   :  { %2308 = vmatprep.subr.bf16.mxu1 %v2511_v31 }
  0x5c   :  { %2287 = vmatpush3.bf16.msra.mxu0 %v2512_v36 }
  0x5d   :  { %2309 = vmatpush3.bf16.msra.mxu1 %v2513_v37  ;;  %2288 = vmatprep.subr.bf16.mxu0 %v2514_v38 }
  0x5e   :  { %2310 = vmatprep.subr.bf16.mxu1 %v2515_v39 }
  0x60   :  { %2289 = vmatpush3.bf16.msra.mxu0 %v2516_v40 }
  0x61   :  { %2311 = vmatpush3.bf16.msra.mxu1 %v2517_v41  ;;  %2318 = vmatprep.subr.bf16.mxu0 %v2518_v42 }
  0x62   :  { %2340 = vmatprep.subr.bf16.mxu1 %v2519_v43 }
  0x63   :  { %1024 = vmatmul.mubr.bf16.vlgmr.msra.gmra.mrb[8].mxu0 %v2743_v35 }
  0x64   :  { %1065 = vmatmul.mubr.bf16.vlgmr.msra.gmra.mrb[8].mxu1 %v2848_v4  ;;  %2319 = vmatpush3.bf16.msra.mxu0 %v2520_v44 }
  0x65   :  { %2341 = vmatpush3.bf16.msra.mxu1 %v2521_v45  ;;  %1501 = vmatprep.mubr.bf16.mxu0 %v2727_v32  ;;  %v2527_v32 = vld [vmem:[%s3158_s1 + $0x3d0] sm:$0xff]  }
  0x66   :  { %2320 = vmatprep.subr.bf16.mxu0 %v2522_v46  ;;  %1542 = vmatprep.mubr.bf16.mxu1 %v2732_v33  ;;  %v2528_v33 = vld [vmem:[%s3158_s1 + $0x310] sm:$0xff]  }
  0x67   :  { %2342 = vmatprep.subr.bf16.mxu1 %v2523_v47 }
  0x68   :  { %2321 = vmatpush3.bf16.msra.mxu0 %v2524_v48 }
  0x69   :  { %2343 = vmatpush3.bf16.msra.mxu1 %v2525_v49  ;;  %2322 = vmatprep.subr.bf16.mxu0 %v2526_v50 }
  0x6a   :  { %2344 = vmatprep.subr.bf16.mxu1 %v2527_v32 }
  0x6c   :  { %2323 = vmatpush3.bf16.msra.mxu0 %v2528_v33 }
  0x6d   :  { %2345 = vmatpush3.bf16.msra.mxu1 %v2529_v51  ;;  %2324 = vmatprep.subr.bf16.mxu0 %v2530_v52 }
  0x6e   :  { %2346 = vmatprep.subr.bf16.mxu1 %v2531_v53 }
  0x70   :  { %2325 = vmatpush3.bf16.msra.mxu0 %v2532_v54 }
  0x71   :  { %2347 = vmatpush3.bf16.msra.mxu1 %v2533_v55  ;;  %2326 = vmatprep.subr.bf16.mxu0 %v2534_v56 }
  0x72   :  { %2348 = vmatprep.subr.bf16.mxu1 %v2535_v57 }
  0x74   :  { %2327 = vmatpush3.bf16.msra.mxu0 %v2536_v58 }
  0x75   :  { %2349 = vmatpush3.bf16.msra.mxu1 %v2537_v59  ;;  %2328 = vmatprep.subr.bf16.mxu0 %v2538_v60 }
  0x76   :  { %2350 = vmatprep.subr.bf16.mxu1 %v2539_v61 }
  0x78   :  { %2329 = vmatpush3.bf16.msra.mxu0 %v2540_v62 }
  0x79   :  { %2351 = vmatpush3.bf16.msra.mxu1 %v2541_v63  ;;  %2330 = vmatprep.subr.bf16.mxu0 %v2542_v0 }
  0x7a   :  { %2352 = vmatprep.subr.bf16.mxu1 %v2543_v1 }
  0x7c   :  { %2331 = vmatpush3.bf16.msra.mxu0 %v2544_v2 }
  0x7d   :  { %2353 = vmatpush3.bf16.msra.mxu1 %v2545_v3  ;;  %2332 = vmatprep.subr.bf16.mxu0 %v2546_v6 }
  0x7e   :  { %2354 = vmatprep.subr.bf16.mxu1 %v2547_v7 }
  0x80   :  { %2333 = vmatpush3.bf16.msra.mxu0 %v2548_v8 }
  0x81   :  { %2355 = vmatpush3.bf16.msra.mxu1 %v2549_v9  ;;  %2362 = vmatprep.subr.bf16.mxu0 %v2550_v10 }
  0x83   :  { %1502 = vmatmul.mubr.bf16.vlgmr.msra.gmra.mrb[12].mxu0 %v2738_v34  ;;  %v2556_v34 = vld [vmem:[%s3158_s1 + $0x458] sm:$0xff]  }
  0x84   :  { %1543 = vmatmul.mubr.bf16.vlgmr.msra.gmra.mrb[12].mxu1 %v2743_v35  ;;  %2363 = vmatpush3.bf16.msra.mxu0 %v2551_v11  ;;  %v2557_v35 = vld [vmem:[%s3158_s1 + $0x418] sm:$0xff]  }
  0x85   :  { %2364 = vmatprep.subr.bf16.mxu0 %v2552_v12  ;;  %1583 = vmatprep.mubr.bf16.mxu0 %v2853_v5  ;;  %v2558_v5 = vld [vmem:[%s3158_s1 + $0x460] sm:$0xff]  }
  0x88   :  { %2365 = vmatpush3.bf16.msra.mxu0 %v2553_v13 }
  0x89   :  { %2366 = vmatprep.subr.bf16.mxu0 %v2554_v14 }
  0x8c   :  { %2367 = vmatpush3.bf16.msra.mxu0 %v2555_v15 }
  0x8d   :  { %2368 = vmatprep.subr.bf16.mxu0 %v2556_v34 }
  0x90   :  { %2369 = vmatpush3.bf16.msra.mxu0 %v2557_v35 }
  0x91   :  { %2370 = vmatprep.subr.bf16.mxu0 %v2558_v5 }
  0x92   :  { %10 = vsyncpa [#allocation3], 0  ;;  %v2561_v18 = vld [vmem:[%s3158_s1 + $0x428] sm:$0xff]   ;;  %v2562_v19 = vld [vmem:[%s3158_s1 + $0x470] sm:$0xff]   ;;  %v2593_v42 = vmov 0.0   ;;  %vm2594_vm0 = vmmov 0  }
  0x93   :  { %v2563_v20 = vld [vmem:[%s3158_s1 + $0x430] sm:$0xff]   ;;  %v2564_v21 = vld [vmem:[%s3158_s1 + $0x478] sm:$0xff]   ;;  %v2566_v41 = vld [vmem:[%s3160_s3] sm:$0xff]   ;;  %2390 = vmatprep.subr.bf16.mxu1 %v2593_v42  ;;  %2392 = vmatprep.mubr.msk.bf16.mxu1 %vm2594_vm0, %v2593_v42  ;;  %vm1079_vm1 = vcmask 1040384   ;;  %vm1598_vm2 = vcmask 1041408   ;;  %vm1623_vm3 = vcmask 130048  }
  0x94   :  { %2371 = vmatpush3.bf16.msra.mxu0 %v2559_v16  ;;  %v2565_v22 = vld [vmem:[%s3158_s1 + $0x438] sm:$0xff]   ;;  %2391 = vmatpush3.bf16.msra.mxu1 %v2566_v41  ;;  %vm1813_vm4 = vcmask 122880  }
  0x95   :  { %2372 = vmatprep.subr.bf16.mxu0 %v2560_v17  ;;  %2396 = vmatprep.subr.bf16.mxu1 %v2593_v42 }
  0x98   :  { %2373 = vmatpush3.bf16.msra.mxu0 %v2561_v18 }
  0x99   :  { %2374 = vmatprep.subr.bf16.mxu0 %v2562_v19 }
  0x9c   :  { %2375 = vmatpush3.bf16.msra.mxu0 %v2563_v20 }
  0x9d   :  { %2376 = vmatprep.subr.bf16.mxu0 %v2564_v21 }
  0xa0   :  { %2377 = vmatpush3.bf16.msra.mxu0 %v2565_v22 }
  0xa3   :  { %1584 = vmatmul.mubr.bf16.vlgmr.msra.gmra.mrb[16].mxu0 %v2848_v4 }
  0xf6   :  { %v2202_v23 = vpop.f32.mrb[0].mxu0 }
  0xf7   :  { %v2224_v24 = vpop.f32.mrb[0].mxu1  ;;  %v2203_v25 = vpop.f32.mrb[1].mxu0 }
  0xf8   :  { %v2225_v26 = vpop.f32.mrb[1].mxu1  ;;  %v2204_v27 = vadd.f32 %v2203_v25, %v2202_v23  ;;  %v2205_v29 = vpop.f32.mrb[2].mxu0 }
  0xf9   :  { %v2226_v28 = vadd.f32 %v2225_v26, %v2224_v24  ;;  %v2227_v30 = vpop.f32.mrb[2].mxu1  ;;  %v2206_v31 = vpop.f32.mrb[3].mxu0 }
  0xfa   :  { %v2228_v36 = vpop.f32.mrb[3].mxu1  ;;  %v2207_v38 = vadd.f32 %v2206_v31, %v2205_v29 }
  0xfb   :  { %v518_v37 = vadd.f32 %v2226_v28, %v2204_v27  ;;  %v2229_v39 = vadd.f32 %v2228_v36, %v2227_v30 }
  0xfd   :  { %v521_v40 = vadd.f32 %v2229_v39, %v2207_v38  ;;  %v2174_v39 = vld [vmem:[%s3159_s2] ss:$0 sm:$0xff] }
 0x116   :  { %v2246_v4 = vpop.f32.mrb[4].mxu0 }
 0x117   :  { %v2247_v43 = vpop.f32.mrb[5].mxu0  ;;  %v2268_v44 = vpop.f32.mrb[4].mxu1 }
 0x118   :  { %v2248_v45 = vadd.f32 %v2247_v43, %v2246_v4  ;;  %v2249_v46 = vpop.f32.mrb[6].mxu0  ;;  %v2269_v47 = vpop.f32.mrb[5].mxu1 }
 0x119   :  { %v2250_v48 = vpop.f32.mrb[7].mxu0  ;;  %v2270_v49 = vadd.f32 %v2269_v47, %v2268_v44  ;;  %v2271_v50 = vpop.f32.mrb[6].mxu1 }
 0x11a   :  { %v559_v32 = vadd.f32 %v2248_v45, %v518_v37  ;;  %v2251_v33 = vadd.f32 %v2250_v48, %v2249_v46  ;;  %v2272_v51 = vpop.f32.mrb[7].mxu1  ;;  %v2567_v48 = vld [vmem:[%s3160_s3 + $0x8] sm:$0xff]  }
 0x11b   :  { %v2273_v52 = vadd.f32 %v2272_v51, %v2271_v50  ;;  %v2568_v50 = vld [vmem:[%s3160_s3 + $0x10] sm:$0xff]  }
 0x11c   :  { %v562_v53 = vadd.f32 %v2251_v33, %v521_v40 }
 0x136   :  { %v2290_v54 = vpop.f32.mrb[8].mxu0 }
 0x137   :  { %v2291_v55 = vpop.f32.mrb[9].mxu0  ;;  %v2312_v56 = vpop.f32.mrb[8].mxu1 }
 0x138   :  { %v2292_v57 = vadd.f32 %v2291_v55, %v2290_v54  ;;  %v2293_v58 = vpop.f32.mrb[10].mxu0  ;;  %v2313_v59 = vpop.f32.mrb[9].mxu1 }
 0x139   :  { %v2294_v60 = vpop.f32.mrb[11].mxu0  ;;  %v2314_v61 = vadd.f32 %v2313_v59, %v2312_v56  ;;  %v2315_v62 = vpop.f32.mrb[10].mxu1 }
 0x13a   :  { %v1026_v63 = vadd.f32 %v2292_v57, %v2270_v49  ;;  %v2295_v0 = vadd.f32 %v2294_v60, %v2293_v58  ;;  %v2316_v1 = vpop.f32.mrb[11].mxu1 }
 0x13b   :  { %v2317_v2 = vadd.f32 %v2316_v1, %v2315_v62 }
 0x13c   :  { %v1029_v3 = vadd.f32 %v2295_v0, %v2273_v52  ;;  %v1067_v6 = vadd.f32 %v2314_v61, %v1026_v63 }
 0x13e   :  { %v1075_v7 = vrot.slane %v1067_v6, 7  ;;  %v1070_v8 = vadd.f32 %v2317_v2, %v1029_v3  ;;  %v2185_v3 = vld [vmem:[%s3161_s4] ss:$0 sm:$0xff]  ;;  %s2595_s4 = smov [#allocation2]  }
 0x13f   :  { %s1821_s18 = sshll.u32 %s2595_s4, 4  ;;  %s1822_s18 = int_to_ptr.vmem [resolvable:$true] %s1821_s18 }
 0x140   :  { %v1080_v9 = vsel %vm1079_vm1, 0.0, %v1075_v7  ;;  %v1076_v10 = vrot.slane %v1070_v8, 7  ;;  %s2569_s19 = scalar_lea.vmem %s1822_s18, 32  ;;  %p2574_p1 = scmp.lt.s32.totalorder %s1822_s18, %s1822_s18 }
 0x141   :  { %v1082_v11 = vadd.f32 %v1080_v9, %v559_v32  ;;  %p2570_p0 = scmp.ne.s32.totalorder %s1822_s18, %s2569_s19  ;;  %p2575_p2 = scmp.lt.s32.totalorder %s2569_s19, %s2569_s19 }
 0x142   :  { %v1081_v12 = vsel %vm1079_vm1, 0.0, %v1076_v10 }
 0x143   :  { %v1083_v13 = vadd.f32 %v1081_v12, %v562_v53  ;;  %p2576_p3 = por %p2575_p2, %p2574_p1 }
 0x145   :  { %p2577_p4 = pnand %p2576_p3, %p2570_p0 }
 0x156   :  { %v2334_v14 = vpop.f32.mrb[12].mxu0 }
 0x157   :  { %v2356_v15 = vpop.f32.mrb[12].mxu1  ;;  %v2335_v34 = vpop.f32.mrb[13].mxu0 }
 0x158   :  { %v2336_v35 = vadd.f32 %v2335_v34, %v2334_v14  ;;  %v2357_v5 = vpop.f32.mrb[13].mxu1  ;;  %v2337_v16 = vpop.f32.mrb[14].mxu0 }
 0x159   :  { %v2358_v17 = vadd.f32 %v2357_v5, %v2356_v15  ;;  %v2359_v18 = vpop.f32.mrb[14].mxu1  ;;  %v2338_v19 = vpop.f32.mrb[15].mxu0 }
 0x15a   :  { %v2339_v20 = vadd.f32 %v2338_v19, %v2337_v16  ;;  %v2360_v21 = vpop.f32.mrb[15].mxu1 }
 0x15b   :  { %v1545_v22 = vadd.f32 %v2358_v17, %v2336_v35  ;;  %v2361_v23 = vadd.f32 %v2360_v21, %v2359_v18 }
 0x15d   :  { %v1548_v24 = vadd.f32 %v2361_v23, %v2339_v20 }
 0x176   :  { %v2378_v25 = vpop.f32.mrb[16].mxu0 }
 0x177   :  { %v2379_v26 = vpop.f32.mrb[17].mxu0 }
 0x178   :  { %v2380_v27 = vadd.f32 %v2379_v26, %v2378_v25  ;;  %v2381_v28 = vpop.f32.mrb[18].mxu0 }
 0x179   :  { %v2382_v29 = vpop.f32.mrb[19].mxu0 }
 0x17a   :  { %v1586_v30 = vadd.f32 %v2380_v27, %v1545_v22  ;;  %v2383_v31 = vadd.f32 %v2382_v29, %v2381_v28 }
 0x17c   :  { %v1594_v36 = vrot.slane %v1586_v30, 6  ;;  %v1589_v37 = vadd.f32 %v2383_v31, %v1548_v24 }
 0x17e   :  { %v1599_v38 = vsel %vm1598_vm2, 0.0, %v1594_v36  ;;  %v1595_v40 = vrot.slane %v1589_v37, 6 }
 0x17f   :  { %v1601_v41 = vadd.f32 %v1599_v38, %v1082_v11 }
 0x180   :  { %v1600_v4 = vsel %vm1598_vm2, 0.0, %v1595_v40 }
 0x181   :  { %v1610_v43 = vadd.f32 %v2174_v39, %v1601_v41  ;;  %v1602_v44 = vadd.f32 %v1600_v4, %v1083_v13 }
 0x183   :  { %v1611_v45 = vadd.f32 %v2174_v39, %v1602_v44  ;;  %v1612_v46 = vmax.f32 %v1610_v43, 0.0 }
 0x185   :  { %v1613_v47 = vmax.f32 %v1611_v45, 0.0 }
 0x187   :  { %v1614_v49 = vpack.c.bf16 %v1613_v47, %v1612_v46 }
 0x189   :  { %2393 = vmatmul.mubr.msk.bf16.vlgmr.msra.gmra.mrb[16].mxu1 %vm1623_vm3, %v1614_v49 }
 0x18a   :  { %2397 = vmatpush3.bf16.msra.mxu1 %v2567_v48  ;;  %2398 = vmatprep.mubr.msk.bf16.mxu1 %vm2594_vm0, %v2593_v42 }
 0x18b   :  { %2402 = vmatprep.subr.bf16.mxu1 %v2593_v42 }
 0x191   :  { %2399 = vmatmul.mubr.msk.bf16.vlgmr.msra.gmra.mrb[20].mxu1 %vm1623_vm3, %v1614_v49 }
 0x192   :  { %2403 = vmatpush3.bf16.msra.mxu1 %v2568_v50  ;;  %2404 = vmatprep.mubr.msk.bf16.mxu1 %vm2594_vm0, %v2593_v42 }
 0x199   :  { %2405 = vmatmul.mubr.msk.bf16.vlgmr.msra.gmra.mrb[24].mxu1 %vm1623_vm3, %v1614_v49 }
 0x25c   :  { %v1661_v32 = vpop.f32.mrb[16].mxu1 }
 0x25d   :  { %v2394_v33 = vpop.f32.mrb[17].mxu1 }
 0x25e   :  { %v1664_v51 = vpop.f32.mrb[18].mxu1 }
 0x25f   :  { %v2395_v52 = vpop.f32.mrb[19].mxu1 }
 0x264   :  { %v1711_v53 = vpop.f32.mrb[20].mxu1 }
 0x265   :  { %v1720_v54 = vrot.slane %v1711_v53, 7  ;;  %v2400_v55 = vpop.f32.mrb[21].mxu1 }
 0x266   :  { %v1714_v56 = vpop.f32.mrb[22].mxu1 }
 0x267   :  { %v1724_v57 = vsel %vm1079_vm1, 0.0, %v1720_v54  ;;  %v1721_v58 = vrot.slane %v1714_v56, 7  ;;  %v2401_v59 = vpop.f32.mrb[23].mxu1 }
 0x268   :  { %v1726_v60 = vadd.f32 %v1724_v57, %v1661_v32 }
 0x269   :  { %v1725_v61 = vsel %vm1079_vm1, 0.0, %v1721_v58 }
 0x26a   :  { %v1727_v62 = vadd.f32 %v1725_v61, %v1664_v51 }
 0x26c   :  { %v1771_v63 = vpop.f32.mrb[24].mxu1 }
 0x26d   :  { %v1780_v42 = vrot.slane %v1771_v63, 6  ;;  %v2406_v0 = vpop.f32.mrb[25].mxu1 }
 0x26e   :  { %v1774_v1 = vpop.f32.mrb[26].mxu1 }
 0x26f   :  { %v1784_v2 = vsel %vm1598_vm2, 0.0, %v1780_v42  ;;  %v1781_v6 = vrot.slane %v1774_v1, 6  ;;  %v2407_v7 = vpop.f32.mrb[27].mxu1 }
 0x270   :  { %v1786_v8 = vadd.f32 %v1784_v2, %v1726_v60 }
 0x271   :  { %v1785_v9 = vsel %vm1598_vm2, 0.0, %v1781_v6 }
 0x272   :  { %v1795_v10 = vadd.f32 %v2185_v3, %v1786_v8  ;;  %v1787_v11 = vadd.f32 %v1785_v9, %v1727_v62 }
 0x274   :  { %v1797_v12 = vmax.f32 %v1795_v10, 0.0  ;;  %v1796_v13 = vadd.f32 %v2185_v3, %v1787_v11 }
 0x276   :  { %v1799_v14 = vsel %vm1623_vm3, %v1797_v12, -inf  ;;  %v1798_v15 = vmax.f32 %v1796_v13, 0.0 }
 0x277   :  { %v1800_v34 = vrot.slane %v1799_v14, 4 }
 0x278   :  { %v1806_v35 = vsel %vm1623_vm3, %v1798_v15, -inf }
 0x279   :  { %v1801_v5 = vmax.f32 %v1799_v14, %v1800_v34  ;;  %v1807_v16 = vrot.slane %v1806_v35, 4 }
 0x27b   :  { %v1802_v17 = vrot.slane %v1801_v5, 2  ;;  %v1808_v18 = vmax.f32 %v1806_v35, %v1807_v16 }
 0x27d   :  { %v1803_v19 = vmax.f32 %v1801_v5, %v1802_v17  ;;  %v1809_v20 = vrot.slane %v1808_v18, 2 }
 0x27f   :  { %v1810_v21 = vmax.f32 %v1808_v18, %v1809_v20  ;;  %v1804_v22 = vrot.slane %v1803_v19, 1 }
 0x281   :  { %v1805_v23 = vmax.f32 %v1803_v19, %v1804_v22  ;;  %v1811_v24 = vrot.slane %v1810_v21, 1 }
 0x283   :  { %v1812_v25 = vmax.f32 %v1810_v21, %v1811_v24  ;;  %1814 = vst.msk [vmem:[#allocation2] sm:$0x1] %vm1813_vm4, %v1805_v23 }
 0x285   :  { %1815 = vst.msk [vmem:[#allocation2 + $0x1] sm:$0x1] %vm1813_vm4, %v1812_v25 }
 0x286   :  { %2580 = shalt.err (!%p2577_p4)
}
 0x287   :  { %s2581_s22 = scalar_lea.hbm %s3162_s5, 32 }
 0x288   :  { %p2582_p5 = scmp.ne.s32.totalorder %s3162_s5, %s2581_s22  ;;  %p2585_p6 = scmp.lt.u32.totalorder %s2581_s22, %s3162_s5 }
 0x28a   :  { %p2587_p7 = pnand %p2585_p6, %p2582_p5 }
 0x28c   :  { %2590 = shalt.err (!%p2587_p7)
}
 0x28d   :  { %s2596_s27 = smov 16   ;;  %s2597_s28 = smov 1  }
 0x28e   :  { %1827 = dma.vmem_to_hbm [thread:$0]  %s1822_s18, 32, %s3162_s5, [#allocation3], %s2596_s27, %s2596_s27, %s2597_s28  }
 0x28f   :  { %2591 = dma.done.wait [#allocation3], 32  }
 0x290   :  { %2592 = vsyncadd [#allocation3], 4294967264 }
 0x291   :  { %1831 = vsyncpa [#allocation3], 1 }

</bundles_post_ra>
